<compile_context>
chip_gen: v7x
topology: tpu7x:2x2x1
jax: 0.10.0
libtpu: 0.0.40
codegen_flags: <defaults>
</compile_context>

<pallas_src>
import jax
import jax.numpy as jnp
from jax.experimental import pallas as pl
from jax.experimental.pallas import tpu as pltpu

NEG_SLOPE = 0.01  # PyTorch F.leaky_relu default
# The max(x, slope*x) identity used in the kernel only holds for 0 < slope < 1.
assert 0.0 < NEG_SLOPE < 1.0, "kernel's max-identity requires 0 < negative_slope < 1"

_MIN_TILE_BYTES = 2 * 1024 * 1024   # floor (fine even on v5e's slower HBM)
_MAX_TILE_BYTES = 8 * 1024 * 1024   # ceiling (v5e/v6e with explicit vmem limit)


def _vmem_capacity_bytes():
    """Per-TensorCore VMEM capacity; conservative (v7x-sized) default on failure."""
    try:
        return int(pltpu.get_tpu_info().vmem_capacity_bytes)
    except Exception:
        return 64 * 1024 * 1024


def _per_buffer_tile_bytes(vmem_cap):
    # ~4 live buffers (input + output, each double-buffered); keep their sum
    # well inside per-core VMEM while amortizing the ~0.35 us grid-step cost.
    #   v5e/v6e (128 MiB VMEM) -> 8 MiB/buffer (~32 MiB pipeline)
    #   v7x     ( 64 MiB VMEM) -> ~6.4 MiB/buffer (~26 MiB pipeline)
    return max(_MIN_TILE_BYTES, min(_MAX_TILE_BYTES, vmem_cap // 10))


def _leaky_relu_kernel(x_ref, o_ref):
    x = x_ref[...]
    # Single VPU max (no compare+select): for 0 < slope < 1,
    # max(x, slope*x) == leaky_relu(x). NaNs propagate (both operands NaN).
    o_ref[...] = jnp.maximum(x, x * jnp.asarray(NEG_SLOPE, x.dtype))


def _launch_2d(x2d, vmem_cap, *, donate=False):
    rows, lane = x2d.shape
    itemsize = jnp.dtype(x2d.dtype).itemsize
    # Sublane multiple for the block's row dim: f32 -> 8, bf16 -> 16, 8-bit -> 32.
    sub = max(8, 32 // itemsize)

    tile_bytes = _per_buffer_tile_bytes(vmem_cap)
    tile_rows = max(sub, (tile_bytes // (lane * itemsize)) // sub * sub)
    tile_rows = min(tile_rows, rows)  # full-extent block for small inputs

    block_bytes = tile_rows * lane * itemsize
    # input + output, each double-buffered, plus headroom for compiler scratch.
    vmem_limit = int(min(vmem_cap * 3 // 4, 4 * block_bytes + (16 << 20)))

    grid = (pl.cdiv(rows, tile_rows),)
    extra = {"input_output_aliases": {0: 0}} if donate else {}

    return pl.pallas_call(
        _leaky_relu_kernel,
        out_shape=jax.ShapeDtypeStruct((rows, lane), x2d.dtype),
        grid_spec=pltpu.PrefetchScalarGridSpec(
            num_scalar_prefetch=0,
            grid=grid,
            in_specs=[pl.BlockSpec((tile_rows, lane), lambda i: (i, 0))],
            out_specs=pl.BlockSpec((tile_rows, lane), lambda i: (i, 0)),
        ),
        compiler_params=pltpu.CompilerParams(
            # "parallel" lets v7x shard row-tiles across its 2 TensorCores
            # (no-op on single-TC v5e/v6e).
            # TODO(synk): verify v7x codegen actually splits this axis across
            # cores; if not, gate pltpu.CORE_PARALLEL on chip version.
            dimension_semantics=("parallel",),
            vmem_limit_bytes=vmem_limit,
        ),
        **extra,
    )(x2d)


def leaky_relu_pallas(x, *, donate=False):
    """leaky_relu(x) with negative_slope=0.01 via a Pallas TPU kernel.

    donate=True aliases the output onto the (reshaped) input allocation; it
    saves peak HBM footprint only, not bandwidth. Use only if `x` is dead.
    """
    orig_shape = x.shape
    n = x.size
    if n == 0:
        return x

    itemsize = jnp.dtype(x.dtype).itemsize
    vmem_cap = _vmem_capacity_bytes()

    # Fast path: flatten to the widest multiple-of-128 lane width dividing n
    # (lane-dense, unmasked vst, no pad/unpad copies).
    lane = None
    for w in (16384, 8192, 4096, 2048, 1024, 512, 256, 128):
        if n % w == 0:
            lane = w
            break
    if lane is not None:
        x2d = x.reshape(n // lane, lane)
    elif x.ndim >= 2:
        # General no-pad path: keep the original last dim as the lane dim; a
        # full-extent last-dim block is exempt from the 128-divisibility rule.
        # Only cost: masked stores on the final partial vreg of each row.
        x2d = x.reshape(-1, orig_shape[-1])
    else:
        x2d = x.reshape(1, n)

    rows, lane = x2d.shape
    sub = max(8, 32 // itemsize)
    # Guard: if even a minimal block would blow VMEM (giant awkward last dim or
    # an un-tileable 1-D size), let XLA's fused maximum handle it — it is
    # already at the HBM roofline for this memory-bound op.
    min_block_bytes = min(sub, rows) * lane * itemsize
    if 4 * min_block_bytes > vmem_cap * 3 // 4:
        # TODO(synk): factor n to find a tileable 2-D view instead of bailing.
        return jnp.maximum(x, x * jnp.asarray(NEG_SLOPE, x.dtype))

    out2d = _launch_2d(x2d, vmem_cap, donate=donate)
    return out2d.reshape(orig_shape)


def leaky_relu_ref(x):
    return jnp.where(x >= 0, x, x * jnp.asarray(NEG_SLOPE, x.dtype))


if __name__ == "__main__":
    key = jax.random.PRNGKey(0)

    # Primary test: NCHW activation, batch=2, channels=4, spatial=16x16
    # (2048 elems -> fast lane-dense path).
    x = jax.random.normal(key, (2, 4, 16, 16), dtype=jnp.float32)
    out = jax.block_until_ready(leaky_relu_pallas(x))
    assert out.shape == x.shape and out.dtype == x.dtype
    assert jnp.allclose(out, leaky_relu_ref(x), atol=1e-6, rtol=1e-6)

    # Awkward size (1155 elems): no-pad general path (full-extent lane dim).
    y = jax.random.normal(jax.random.PRNGKey(0), (3, 5, 7, 11), dtype=jnp.float32)
    out_y = jax.block_until_ready(leaky_relu_pallas(y))
    assert jnp.allclose(out_y, leaky_relu_ref(y), atol=1e-6, rtol=1e-6)

    # bf16 path (16-row sublane multiple handling).
    z = jax.random.normal(jax.random.PRNGKey(0), (2, 4, 16, 16), dtype=jnp.bfloat16)
    out_z = jax.block_until_ready(leaky_relu_pallas(z))
    assert out_z.dtype == jnp.bfloat16
    assert jnp.allclose(out_z.astype(jnp.float32),
                        leaky_relu_ref(z).astype(jnp.float32),
                        atol=1e-2, rtol=1e-2)

    print("KERNEL_OK")
</pallas_src>

<mosaic_0001>
module attributes {stable_mosaic.version = 11 : i64} {
  func.func @_leaky_relu_kernel(%arg0: i32, %arg1: memref<1x2048xf32, #tpu.memory_space<vmem>>, %arg2: memref<1x2048xf32, #tpu.memory_space<vmem>>) attributes {dimension_semantics = [#tpu.dimension_semantics<parallel>], iteration_bounds = array<i64: 1>, scalar_prefetch = 0 : i64, scratch_operands = 0 : i64, tpu.core_type = #tpu.core_type<tc>, window_params = [{transform_indices = @transform_0, window_bounds = array<i64: 1, 2048>}, {transform_indices = @transform_1, window_bounds = array<i64: 1, 2048>}]} {
    %c0 = arith.constant 0 : index
    %c0_0 = arith.constant 0 : index
    %0 = vector.load %arg1[%c0, %c0_0] : memref<1x2048xf32, #tpu.memory_space<vmem>>, vector<1x2048xf32>
    %cst = arith.constant 0.00999999977 : f32
    %1 = vector.broadcast %cst : f32 to vector<1x2048xf32>
    %2 = arith.mulf %0, %1 : vector<1x2048xf32>
    %3 = arith.maximumf %0, %2 : vector<1x2048xf32>
    %c0_1 = arith.constant 0 : index
    %c0_2 = arith.constant 0 : index
    %4 = vector.load %arg2[%c0_1, %c0_2] : memref<1x2048xf32, #tpu.memory_space<vmem>>, vector<1x2048xf32>
    tpu.vector_store %arg2[%c0_1, %c0_2], %3 {strides = array<i32>} : memref<1x2048xf32, #tpu.memory_space<vmem>>, vector<1x2048xf32>,
    return
  }
  func.func @transform_0(%arg0: i32) -> (i32, i32) {
    %c0_i32 = arith.constant 0 : i32
    %c0_i32_0 = arith.constant 0 : i32
    return %arg0, %c0_i32 : i32, i32
  }
  func.func @transform_1(%arg0: i32) -> (i32, i32) {
    %c0_i32 = arith.constant 0 : i32
    %c0_i32_0 = arith.constant 0 : i32
    return %arg0, %c0_i32 : i32, i32
  }
}

</mosaic_0001>

<bundles_post_ra>
// kernel: tpu_custom_call.1
= control target key start
LH: loop header
LB: loop body
LE: loop exit
PB: predicated region body
PF: predicated region fallthrough
CT: control target
= control target key end

     0   :  { %6 = vsyncpa [#allocation3], 0  ;;  %s130_s0 = inlined_call_operand.hbm [shape: f32[1,2048], index: 0, kind: input, shape index: {}]   ;;  %s131_s1 = inlined_call_operand.hbm [shape: f32[1,2048], index: 1, kind: output, shape index: {}]  }
   0x1   :  { %7 = vsyncpa [#allocation4], 0  ;;  %s94_s6 = smov [#allocation2]   ;;  %s46_s10 = scalar_lea.hbm %s130_s0, 256 }
   0x2   :  { %s14_s7 = sshll.u32 %s94_s6, 4  ;;  %p47_p0 = scmp.ne.s32.totalorder %s130_s0, %s46_s10  ;;  %s15_s7 = int_to_ptr.vmem [resolvable:$true] %s14_s7 }
   0x3   :  { %p50_p1 = scmp.lt.u32.totalorder %s46_s10, %s130_s0 }
   0x5   :  { %p52_p2 = pnand %p50_p1, %p47_p0 }
   0x7   :  { %55 = shalt.err (!%p52_p2)
}
   0x8   :  { %s56_s15 = scalar_lea.vmem %s15_s7, 256  ;;  %p61_p4 = scmp.lt.s32.totalorder %s15_s7, %s15_s7 }
   0x9   :  { %p57_p3 = scmp.ne.s32.totalorder %s15_s7, %s56_s15  ;;  %p62_p5 = scmp.lt.s32.totalorder %s56_s15, %s56_s15 }
   0xb   :  { %p63_p6 = por %p62_p5, %p61_p4 }
   0xd   :  { %p64_p7 = pnand %p63_p6, %p57_p3 }
   0xf   :  { %67 = shalt.err (!%p64_p7)
}
  0x10   :  { %17 = dma.hbm_to_vmem [thread:$0]  %s130_s0, 256, %s15_s7, [#allocation3]  }
  0x11   :  { %90 = dma.done.wait [#allocation3], 256  }
  0x12   :  { %91 = vsyncadd [#allocation3], 4294967040  ;;  %v21_v0 = vld [vmem:[#allocation2] sm:$0xff]  ;;  %v22_v1 = vld [vmem:[#allocation2 + $0x8] sm:$0xff]  ;;  %s95_s18 = smov [#allocation5]  }
  0x13   :  { %s35_s19 = sshll.u32 %s95_s18, 4  ;;  %v23_v2 = vmul.f32 0.01, %v21_v0  ;;  %v24_v3 = vmul.f32 0.01, %v22_v1  ;;  %s36_s19 = int_to_ptr.vmem [resolvable:$true] %s35_s19 }
  0x14   :  { %s68_s20 = scalar_lea.vmem %s36_s19, 256  ;;  %p73_p9 = scmp.lt.s32.totalorder %s36_s19, %s36_s19 }
  0x15   :  { %v25_v4 = vmax.f32 %v21_v0, %v23_v2  ;;  %v26_v5 = vmax.f32 %v22_v1, %v24_v3  ;;  %p69_p8 = scmp.ne.s32.totalorder %s36_s19, %s68_s20  ;;  %p74_p10 = scmp.lt.s32.totalorder %s68_s20, %s68_s20 }
  0x17   :  { %27 = vst [vmem:[#allocation5] sm:$0xff] %v25_v4  ;;  %28 = vst [vmem:[#allocation5 + $0x8] sm:$0xff] %v26_v5  ;;  %p75_p11 = por %p74_p10, %p73_p9 }
  0x19   :  { %p76_p12 = pnand %p75_p11, %p69_p8 }
  0x1b   :  { %79 = shalt.err (!%p76_p12)
}
  0x1c   :  { %s80_s22 = scalar_lea.hbm %s131_s1, 256 }
  0x1d   :  { %p81_p13 = scmp.ne.s32.totalorder %s131_s1, %s80_s22  ;;  %p84_p0 = scmp.lt.u32.totalorder %s80_s22, %s131_s1 }
  0x1f   :  { %p86_p1 = pnand %p84_p0, %p81_p13 }
  0x21   :  { %89 = shalt.err (!%p86_p1)
}
  0x22   :  { %38 = dma.vmem_to_hbm [thread:$0]  %s36_s19, 256, %s131_s1, [#allocation4]  }
  0x23   :  { %92 = dma.done.wait [#allocation4], 256  }
  0x24   :  { %93 = vsyncadd [#allocation4], 4294967040 }
  0x25   :  { %42 = vsyncpa [#allocation3], 1 }
  0x26   :  { %43 = vsyncpa [#allocation4], 1 }

</bundles_post_ra>
